<compile_context>
chip_gen: v5e
topology: v5e:2x2
jax: 0.10.0
libtpu: 0.0.40
codegen_flags: <defaults>
</compile_context>

<pallas_src>
import functools
import math

import jax
import jax.numpy as jnp
from jax.experimental import pallas as pl
from jax.experimental.pallas import tpu as pltpu


_MAX_LANE_TILE = 2048            # lane tile for vocab / extended vocab (multiple of 128)
_LOG_EPS = math.log(1e-12)       # torch.log(0 + 1e-12)


def _round_up(x, m):
    return ((x + m - 1) // m) * m


def _cdiv(a, b):
    return (a + b - 1) // b


@functools.lru_cache(maxsize=None)
def _vmem_budget():
    """(vmem_limit_bytes, resident-block budget) derived from the chip."""
    cap = 64 * 2**20                                  # conservative default (v7x)
    try:
        info = pltpu.get_tpu_info()
        cap = int(getattr(info, "vmem_capacity_bytes", cap) or cap)
    except Exception:
        pass
    limit = max(32 * 2**20, min(cap - 12 * 2**20, 100 * 2**20))
    return limit, limit // 2


def _choose_row_tiles(r, v, in_item, out_item):
    """Row/vocab tiles for the stats + plain-softmax kernels."""
    _, budget = _vmem_budget()
    v_tile = v if v <= _MAX_LANE_TILE else _MAX_LANE_TILE
    r_tile = r if r < 8 else min(256, _round_up(r, 8))

    def use(rt):
        return 2 * rt * v_tile * (in_item + out_item) + 4 * rt * v_tile * 4

    while r_tile > 8 and use(r_tile) > budget:
        r_tile = _round_up(max(8, r_tile // 2), 8)
    return r_tile, v_tile


def _choose_copy_tiles(t, s, vext, in_item, out_item):
    """(t_tile, n_tile) for the copy-mechanism kernel."""
    _, budget = _vmem_budget()
    n_tile = min(_MAX_LANE_TILE, _round_up(vext, 128))
    t_tile = t if t < 8 else min(256, _round_up(t, 8))

    def use(tt, nt):
        blocks = 2 * tt * nt * (in_item + out_item)              # logits + out (double buffered)
        blocks += 2 * tt * s * in_item + 2 * s * 4 + 2 * tt * 3 * 4
        temps = 5 * tt * nt * 4 + s * nt * 4 + tt * s * 4        # f32 temporaries + one-hot
        return blocks + temps

    while t_tile > 8 and use(t_tile, n_tile) > budget:
        t_tile = _round_up(max(8, t_tile // 2), 8)
    while n_tile > 512 and use(t_tile, n_tile) > budget:
        n_tile //= 2
    return t_tile, n_tile


# ----------------------------------------------------------------------------
# Pass 1: per-row softmax statistics (online max / sum over vocab tiles)
# ----------------------------------------------------------------------------
def _row_stats_kernel(x_ref, stats_ref, m_ref, s_ref, *, v, v_tile, mask_cols):
    vi = pl.program_id(1)

    @pl.when(vi == 0)
    def _():
        m_ref[...] = jnp.full(m_ref.shape, -jnp.inf, jnp.float32)
        s_ref[...] = jnp.zeros(s_ref.shape, jnp.float32)

    x = x_ref[...].astype(jnp.float32)                           # (r_tile, v_tile)
    if mask_cols:
        col = jax.lax.broadcasted_iota(jnp.int32, x.shape, 1) + vi * v_tile
        valid = col < v
        x_for_max = jnp.where(valid, x, -jnp.inf)
    else:
        valid = None
        x_for_max = x

    m_old = m_ref[...]
    m_new = jnp.maximum(m_old, jnp.max(x_for_max, axis=-1, keepdims=True))
    p = jnp.exp(x - m_new)
    if mask_cols:
        p = jnp.where(valid, p, 0.0)
    s_ref[...] = s_ref[...] * jnp.exp(m_old - m_new) + jnp.sum(p, axis=-1, keepdims=True)
    m_ref[...] = m_new

    @pl.when(vi == pl.num_programs(1) - 1)
    def _():
        stats_ref[:, 0:1] = m_ref[...]
        stats_ref[:, 1:2] = s_ref[...]


def _row_stats(x2):
    """x2: (R, V) -> (R, 2) float32 with columns (row_max, sum_exp)."""
    r, v = x2.shape
    vmem_limit, _ = _vmem_budget()
    r_tile, v_tile = _choose_row_tiles(r, v, jnp.dtype(x2.dtype).itemsize, 0)
    grid = (_cdiv(r, r_tile), _cdiv(v, v_tile))
    return pl.pallas_call(
        functools.partial(_row_stats_kernel, v=v, v_tile=v_tile,
                          mask_cols=(v % v_tile != 0)),
        out_shape=jax.ShapeDtypeStruct((r, 2), jnp.float32),
        grid=grid,
        in_specs=[pl.BlockSpec((r_tile, v_tile), lambda ri, vi: (ri, vi))],
        out_specs=pl.BlockSpec((r_tile, 2), lambda ri, vi: (ri, 0)),
        scratch_shapes=[pltpu.VMEM((r_tile, 1), jnp.float32),
                        pltpu.VMEM((r_tile, 1), jnp.float32)],
        compiler_params=pltpu.CompilerParams(
            dimension_semantics=("parallel", "arbitrary"),
            vmem_limit_bytes=vmem_limit),
    )(x2)


# ----------------------------------------------------------------------------
# Plain (no copy mechanism) softmax / log_softmax
# ----------------------------------------------------------------------------
def _normalize_kernel(x_ref, stats_ref, o_ref, *, log_probs):
    x = x_ref[...].astype(jnp.float32)
    m = stats_ref[:, 0:1]
    s = stats_ref[:, 1:2]
    if log_probs:
        o_ref[...] = ((x - m) - jnp.log(s)).astype(o_ref.dtype)
    else:
        o_ref[...] = (jnp.exp(x - m) * pl.reciprocal(s)).astype(o_ref.dtype)


def _plain_softmax(logits, log_probs, out_dtype):
    shape = logits.shape
    v = shape[-1]
    r = int(math.prod(shape[:-1])) if len(shape) > 1 else 1
    x2 = logits.reshape(r, v)
    stats = _row_stats(x2)

    vmem_limit, _ = _vmem_budget()
    r_tile, v_tile = _choose_row_tiles(r, v, jnp.dtype(logits.dtype).itemsize,
                                       jnp.dtype(out_dtype).itemsize)
    out = pl.pallas_call(
        functools.partial(_normalize_kernel, log_probs=log_probs),
        out_shape=jax.ShapeDtypeStruct((r, v), out_dtype),
        grid=(_cdiv(r, r_tile), _cdiv(v, v_tile)),
        in_specs=[pl.BlockSpec((r_tile, v_tile), lambda ri, vi: (ri, vi)),
                  pl.BlockSpec((r_tile, 2), lambda ri, vi: (ri, 0))],
        out_specs=pl.BlockSpec((r_tile, v_tile), lambda ri, vi: (ri, vi)),
        compiler_params=pltpu.CompilerParams(
            dimension_semantics=("parallel", "parallel"),
            vmem_limit_bytes=vmem_limit),
    )(x2, stats)
    return out.reshape(shape)


# ----------------------------------------------------------------------------
# Pass 2: copy-mechanism normalized probs over the extended vocab
# ----------------------------------------------------------------------------
def _copy_probs_kernel(hit_ref, logits_ref, copy_ref, src_ref, alpha_ref,
                       stats_ref, out_ref, *, log_probs, n_tile, v):
    """One (batch, T-tile, extended-vocab tile).

    hit_ref    : SMEM (B, num_n) int32  -- 1 iff this vext tile holds a src idx
    logits_ref : (1, t_tile, n_tile)    -- clamped to the last real vocab block
    copy_ref   : (1, t_tile, S)
    src_ref    : (1, S, 1) int32        -- indices into [0, V+S)
    alpha_ref  : (1, t_tile, 1) f32
    stats_ref  : (1, t_tile, 2) f32     -- (row max, sum_exp) over the true vocab
    out_ref    : (1, t_tile, n_tile)
    """
    bi = pl.program_id(0)
    n = pl.program_id(2)
    start = pl.multiple_of(n * n_tile, n_tile)

    m = stats_ref[0, :, 0:1]
    s = stats_ref[0, :, 1:2]
    alpha = alpha_ref[0].astype(jnp.float32)                     # (t_tile, 1)

    x = logits_ref[0].astype(jnp.float32)                        # (t_tile, n_tile)
    col = jax.lax.broadcasted_iota(jnp.int32, (1, n_tile), 1) + start
    in_vocab = col < v                                           # (1, n_tile)
    xm = x - m

    if log_probs:
        # Log-space fast path: no transcendentals on (the common) no-hit tiles.
        # Clamp at log(1e-12) so zero-probability columns match torch's
        # log(p + 1e-12) exactly; columns with p ~ 1e-12 differ by <= log(2).
        log_scale = jnp.log(alpha) - jnp.log(s)
        nohit = jnp.where(in_vocab, jnp.maximum(xm + log_scale, _LOG_EPS), _LOG_EPS)
        out_ref[0] = nohit.astype(out_ref.dtype)
        base = None
    else:
        scale = alpha * pl.reciprocal(s)
        base = jnp.where(in_vocab, jnp.exp(xm) * scale, 0.0)
        out_ref[0] = base.astype(out_ref.dtype)

    # scatter_add_(dim=-1, index=src_tokens, src=(1-alpha)*copy_scores),
    # restricted to this tile, as a one-hot MXU matmul.  Only runs on tiles
    # that actually contain a source-token index.
    @pl.when(hit_ref[bi, n] != 0)
    def _():
        if log_probs:
            b_ = jnp.where(in_vocab, jnp.exp(xm) * (alpha * pl.reciprocal(s)), 0.0)
        else:
            b_ = base
        copyw = (1.0 - alpha) * copy_ref[0].astype(jnp.float32)          # (t_tile, S)
        src = src_ref[0]                                                  # (S, 1)
        lane = jax.lax.broadcasted_iota(jnp.int32, (src.shape[0], n_tile), 1) + start
        one_hot = (lane == src).astype(jnp.float32)                       # (S, n_tile)
        contrib = jnp.dot(copyw, one_hot, preferred_element_type=jnp.float32)
        r = b_ + contrib
        if log_probs:
            r = jnp.log(r + 1e-12)                                        # matches fairseq
        out_ref[0] = r.astype(out_ref.dtype)


def _copy_probs(logits, copy_scores, src_tokens, alpha, log_probs, out_dtype):
    b, t, v = logits.shape
    s = src_tokens.shape[-1]
    vext = v + s
    vmem_limit, _ = _vmem_budget()

    # Pass 1: row softmax stats over the true vocab (shared with plain path).
    stats = _row_stats(logits.reshape(b * t, v)).reshape(b, t, 2)

    t_tile, n_tile = _choose_copy_tiles(
        t, s, vext, jnp.dtype(logits.dtype).itemsize, jnp.dtype(out_dtype).itemsize)
    num_n = _cdiv(vext, n_tile)
    last_v_blk = _cdiv(v, n_tile) - 1

    # Per-(batch, vext-tile) "contains a src index" mask (scalar prefetch).
    tile_of_src = (src_tokens // n_tile).astype(jnp.int32)                     # (B, S)
    hit = (tile_of_src[:, :, None] ==
           jnp.arange(num_n, dtype=jnp.int32)[None, None, :]).any(axis=1)
    hit = hit.astype(jnp.int32)                                                # (B, num_n)

    src3 = src_tokens.reshape(b, s, 1).astype(jnp.int32)

    kernel = functools.partial(_copy_probs_kernel, log_probs=log_probs,
                               n_tile=n_tile, v=v)

    return pl.pallas_call(
        kernel,
        out_shape=jax.ShapeDtypeStruct((b, t, vext), out_dtype),
        grid_spec=pltpu.PrefetchScalarGridSpec(
            num_scalar_prefetch=1,
            grid=(b, _cdiv(t, t_tile), num_n),
            in_specs=[
                # Clamp the vocab block index so extension-only tiles re-use
                # the last real vocab block (masked away in-kernel).
                pl.BlockSpec((1, t_tile, n_tile),
                             lambda bi, ti, n, h: (bi, ti, jnp.minimum(n, last_v_blk))),
                pl.BlockSpec((1, t_tile, s), lambda bi, ti, n, h: (bi, ti, 0)),
                pl.BlockSpec((1, s, 1),      lambda bi, ti, n, h: (bi, 0, 0)),
                pl.BlockSpec((1, t_tile, 1), lambda bi, ti, n, h: (bi, ti, 0)),
                pl.BlockSpec((1, t_tile, 2), lambda bi, ti, n, h: (bi, ti, 0)),
            ],
            out_specs=pl.BlockSpec((1, t_tile, n_tile),
                                   lambda bi, ti, n, h: (bi, ti, n)),
        ),
        compiler_params=pltpu.CompilerParams(
            dimension_semantics=("parallel", "parallel", "parallel"),
            vmem_limit_bytes=vmem_limit),
    )(hit, logits, copy_scores, src3, alpha, stats)


# ----------------------------------------------------------------------------
# Module port
# ----------------------------------------------------------------------------
class FairseqDecoderPallas:
    """JAX/Pallas port of fairseq's FairseqDecoder base class."""

    def __init__(self, dictionary=None):
        self.dictionary = dictionary

    def forward(self, prev_output_tokens, encoder_out):
        raise NotImplementedError  # abstract in the reference module too

    def get_normalized_probs(self, net_output, log_probs, _=None,
                             out_dtype=jnp.float32):
        logits = net_output['decoder_out']
        copy_scores = net_output.get('copy_scores', None)

        if copy_scores is None:
            return _plain_softmax(logits, log_probs, out_dtype)

        alpha = net_output['copy_alpha']
        src_tokens = net_output['src_tokens']

        incre = logits.ndim == 2
        if incre:
            logits = logits[:, None, :]                  # torch: unsqueeze(1)
        if copy_scores.ndim == 2:
            copy_scores = copy_scores[:, None, :]
        b, t, _ = logits.shape

        # Normalize alpha to (B, T, 1) float32.
        alpha = jnp.asarray(alpha, jnp.float32)
        if alpha.ndim == 0:
            alpha = alpha[None, None, None]
        elif alpha.ndim == 1:
            alpha = alpha[:, None, None]
        elif alpha.ndim == 2:
            alpha = alpha[:, :, None]
        alpha = jnp.broadcast_to(alpha, (b, t, 1))

        result = _copy_probs(logits, copy_scores, src_tokens, alpha,
                             log_probs, out_dtype)
        if incre:
            # torch `.squeeze()` removes ALL size-1 dims; mirrored intentionally.
            result = jnp.squeeze(result)
        return result

    def max_positions(self):
        raise NotImplementedError

    def upgrade_state_dict(self, state_dict):
        return state_dict


# ----------------------------------------------------------------------------
# Pure-JAX reference (mirrors the PyTorch code) for verification
# ----------------------------------------------------------------------------
def _reference(logits, copy_scores, src_tokens, alpha, log_probs):
    b, t, v = logits.shape
    s = src_tokens.shape[-1]
    p = jax.nn.softmax(logits.astype(jnp.float32), axis=-1)
    ext = jnp.concatenate([p, jnp.zeros((b, t, s), jnp.float32)], axis=-1)
    ext = alpha * ext
    cs = (1.0 - alpha) * copy_scores.astype(jnp.float32)
    idx = jnp.broadcast_to(src_tokens[:, None, :], (b, t, s))
    one_hot = jax.nn.one_hot(idx, v + s, dtype=jnp.float32)          # (B,T,S,V+S)
    ext = ext + jnp.einsum('bts,btsv->btv', cs, one_hot)
    return jnp.log(ext + 1e-12) if log_probs else ext


# ----------------------------------------------------------------------------
if __name__ == "__main__":
    key = jax.random.PRNGKey(0)
    ks = jax.random.split(key, 10)

    decoder = FairseqDecoderPallas(dictionary=None)

    # ---------------- small config: single extended-vocab tile -------------
    B, T, V, S = 2, 8, 32, 8
    logits = jax.random.normal(ks[0], (B, T, V), jnp.float32)
    copy_scores = jax.nn.softmax(jax.random.normal(ks[1], (B, T, S), jnp.float32), axis=-1)
    copy_alpha = jax.nn.sigmoid(jax.random.normal(ks[2], (B, T, 1), jnp.float32))
    src_tokens = jax.random.randint(ks[3], (B, S), 0, V, jnp.int32)

    net = {'decoder_out': logits, 'copy_scores': copy_scores,
           'copy_alpha': copy_alpha, 'src_tokens': src_tokens}

    probs = decoder.get_normalized_probs(net, False, None)
    lprobs = decoder.get_normalized_probs(net, True, None)
    jax.block_until_ready(probs)
    jax.block_until_ready(lprobs)

    alpha3 = jnp.broadcast_to(copy_alpha, (B, T, 1))
    ref_p = _reference(logits, copy_scores, src_tokens, alpha3, False)
    ref_lp = _reference(logits, copy_scores, src_tokens, alpha3, True)
    assert probs.shape == (B, T, V + S)
    assert jnp.allclose(probs, ref_p, atol=1e-5), "copy probs mismatch"
    assert jnp.allclose(lprobs, ref_lp, atol=1e-4), "copy log-probs mismatch"
    assert jnp.allclose(jnp.sum(probs, axis=-1), 1.0, atol=1e-4)

    # bf16 inputs ride the DMA path directly; math is f32.
    net_bf16 = dict(net, decoder_out=logits.astype(jnp.bfloat16),
                    copy_scores=copy_scores.astype(jnp.bfloat16))
    probs_bf16 = decoder.get_normalized_probs(net_bf16, False, None)
    jax.block_until_ready(probs_bf16)
    ref_bf16 = _reference(logits.astype(jnp.bfloat16).astype(jnp.float32),
                          copy_scores.astype(jnp.bfloat16).astype(jnp.float32),
                          src_tokens, alpha3, False)
    assert jnp.allclose(probs_bf16, ref_bf16, atol=1e-4), "bf16 copy probs mismatch"

    # Optional bf16 OUTPUT (halves the dominant HBM write stream).
    probs_bo = decoder.get_normalized_probs(net, False, None, out_dtype=jnp.bfloat16)
    jax.block_until_ready(probs_bo)
    assert probs_bo.dtype == jnp.bfloat16
    assert jnp.allclose(probs_bo.astype(jnp.float32), ref_p, atol=2e-2)

    # incremental-decoding path (2-D logits -> unsqueeze / squeeze like torch)
    incre_out = decoder.get_normalized_probs(
        {'decoder_out': logits[:, 0, :], 'copy_scores': copy_scores[:, 0, :],
         'copy_alpha': copy_alpha[:, 0:1, :], 'src_tokens': src_tokens},
        False, None)
    jax.block_until_ready(incre_out)
    ref_incre = jnp.squeeze(_reference(logits[:, None, 0, :], copy_scores[:, None, 0, :],
                                       src_tokens, copy_alpha[:, 0:1, :], False))
    assert incre_out.shape == (B, V + S)
    assert jnp.allclose(incre_out, ref_incre, atol=1e-5), "incre copy probs mismatch"

    # no-copy path (plain softmax / log_softmax kernels)
    plain_lp = decoder.get_normalized_probs({'decoder_out': logits, 'copy_scores': None},
                                            True, None)
    plain_p = decoder.get_normalized_probs({'decoder_out': logits, 'copy_scores': None},
                                           False, None)
    jax.block_until_ready(plain_lp)
    assert jnp.allclose(plain_lp, jax.nn.log_softmax(logits, axis=-1), atol=1e-5)
    assert jnp.allclose(plain_p, jax.nn.softmax(logits, axis=-1), atol=1e-5)

    # -------- larger config: multiple vext tiles, exercises hit-gated ------
    # -------- scatter, clamped logits index map and the log fast path ------
    B2, T2, V2, S2 = 2, 8, 4000, 128
    logits2 = jax.random.normal(ks[4], (B2, T2, V2), jnp.float32)
    copy2 = jax.nn.softmax(jax.random.normal(ks[5], (B2, T2, S2), jnp.float32), axis=-1)
    alpha2 = jax.nn.sigmoid(jax.random.normal(ks[6], (B2, T2, 1), jnp.float32))
    src2 = jnp.concatenate([
        jax.random.randint(ks[7], (1, S2), 0, 512, jnp.int32),            # hits tile 0 only
        jax.random.randint(ks[8], (1, S2), V2 - 8, V2 + S2, jnp.int32),   # vocab tail + extension
    ], axis=0)
    net2 = {'decoder_out': logits2, 'copy_scores': copy2,
            'copy_alpha': alpha2, 'src_tokens': src2}

    probs2 = decoder.get_normalized_probs(net2, False, None)
    lprobs2 = decoder.get_normalized_probs(net2, True, None)
    jax.block_until_ready(probs2)
    jax.block_until_ready(lprobs2)

    a2 = jnp.broadcast_to(alpha2, (B2, T2, 1))
    ref2_p = _reference(logits2, copy2, src2, a2, False)
    ref2_lp = _reference(logits2, copy2, src2, a2, True)
    assert probs2.shape == (B2, T2, V2 + S2)
    assert jnp.allclose(probs2, ref2_p, atol=1e-5), "large copy probs mismatch"
    assert jnp.allclose(lprobs2, ref2_lp, atol=5e-4), "large copy log-probs mismatch"
    assert jnp.allclose(jnp.sum(probs2, axis=-1), 1.0, atol=1e-3)

    print("KERNEL_OK")
</pallas_src>

<mosaic_0001>
module attributes {stable_mosaic.version = 11 : i64} {
  func.func @_row_stats_kernel(%arg0: i32, %arg1: i32, %arg2: memref<16x32xf32, #tpu.memory_space<vmem>>, %arg3: memref<16x2xf32, #tpu.memory_space<vmem>>, %arg4: memref<16x1xf32, #tpu.memory_space<vmem>>, %arg5: memref<16x1xf32, #tpu.memory_space<vmem>>) attributes {dimension_semantics = [#tpu.dimension_semantics<parallel>, #tpu.dimension_semantics<arbitrary>], iteration_bounds = array<i64: 1, 1>, scalar_prefetch = 0 : i64, scratch_operands = 2 : i64, tpu.core_type = #tpu.core_type<tc>, window_params = [{transform_indices = @transform_0, window_bounds = array<i64: 16, 32>}, {transform_indices = @transform_1, window_bounds = array<i64: 16, 2>}]} {
    %c0_i32 = arith.constant 0 : i32
    %0 = arith.cmpi eq, %arg1, %c0_i32 : i32
    %1 = arith.extui %0 : i1 to i32
    %c0_i32_0 = arith.constant 0 : i32
    %2 = arith.cmpi ne, %1, %c0_i32_0 : i32
    scf.if %2 {
      %cst_13 = arith.constant 0xFF800000 : f32
      %23 = vector.broadcast %cst_13 : f32 to vector<16x1xf32>
      %c0_14 = arith.constant 0 : index
      %c0_15 = arith.constant 0 : index
      %24 = vector.load %arg4[%c0_14, %c0_15] : memref<16x1xf32, #tpu.memory_space<vmem>>, vector<16x1xf32>
      tpu.vector_store %arg4[%c0_14, %c0_15], %23 {strides = array<i32>} : memref<16x1xf32, #tpu.memory_space<vmem>>, vector<16x1xf32>,
      %cst_16 = arith.constant 0.000000e+00 : f32
      %25 = vector.broadcast %cst_16 : f32 to vector<16x1xf32>
      %c0_17 = arith.constant 0 : index
      %c0_18 = arith.constant 0 : index
      %26 = vector.load %arg5[%c0_17, %c0_18] : memref<16x1xf32, #tpu.memory_space<vmem>>, vector<16x1xf32>
      tpu.vector_store %arg5[%c0_17, %c0_18], %25 {strides = array<i32>} : memref<16x1xf32, #tpu.memory_space<vmem>>, vector<16x1xf32>,
    } else {
    }
    %c0 = arith.constant 0 : index
    %c0_1 = arith.constant 0 : index
    %3 = vector.load %arg2[%c0, %c0_1] : memref<16x32xf32, #tpu.memory_space<vmem>>, vector<16x32xf32>
    %c0_2 = arith.constant 0 : index
    %c0_3 = arith.constant 0 : index
    %4 = vector.load %arg4[%c0_2, %c0_3] : memref<16x1xf32, #tpu.memory_space<vmem>>, vector<16x1xf32>
    %cst = arith.constant dense<0xFF800000> : vector<16xf32>
    %5 = vector.multi_reduction <maximumf>, %3, %cst [1] : vector<16x32xf32> to vector<16xf32>
    %6 = vector.shape_cast %5 : vector<16xf32> to vector<16x1xf32>
    %7 = arith.maximumf %4, %6 : vector<16x1xf32>
    %8 = vector.broadcast %7 : vector<16x1xf32> to vector<16x32xf32>
    %9 = arith.subf %3, %8 : vector<16x32xf32>
    %10 = math.exp %9 : vector<16x32xf32>
    %c0_4 = arith.constant 0 : index
    %c0_5 = arith.constant 0 : index
    %11 = vector.load %arg5[%c0_4, %c0_5] : memref<16x1xf32, #tpu.memory_space<vmem>>, vector<16x1xf32>
    %12 = arith.subf %4, %7 : vector<16x1xf32>
    %13 = math.exp %12 : vector<16x1xf32>
    %14 = arith.mulf %11, %13 : vector<16x1xf32>
    %cst_6 = arith.constant dense<0.000000e+00> : vector<16xf32>
    %15 = vector.multi_reduction <add>, %10, %cst_6 [1] : vector<16x32xf32> to vector<16xf32>
    %16 = vector.shape_cast %15 : vector<16xf32> to vector<16x1xf32>
    %17 = arith.addf %14, %16 : vector<16x1xf32>
    %c0_7 = arith.constant 0 : index
    %c0_8 = arith.constant 0 : index
    %18 = vector.load %arg5[%c0_7, %c0_8] : memref<16x1xf32, #tpu.memory_space<vmem>>, vector<16x1xf32>
    tpu.vector_store %arg5[%c0_7, %c0_8], %17 {strides = array<i32>} : memref<16x1xf32, #tpu.memory_space<vmem>>, vector<16x1xf32>,
    %c0_9 = arith.constant 0 : index
    %c0_10 = arith.constant 0 : index
    %19 = vector.load %arg4[%c0_9, %c0_10] : memref<16x1xf32, #tpu.memory_space<vmem>>, vector<16x1xf32>
    tpu.vector_store %arg4[%c0_9, %c0_10], %7 {strides = array<i32>} : memref<16x1xf32, #tpu.memory_space<vmem>>, vector<16x1xf32>,
    %c0_i32_11 = arith.constant 0 : i32
    %20 = arith.cmpi eq, %arg1, %c0_i32_11 : i32
    %21 = arith.extui %20 : i1 to i32
    %c0_i32_12 = arith.constant 0 : i32
    %22 = arith.cmpi ne, %21, %c0_i32_12 : i32
    scf.if %22 {
      %c0_13 = arith.constant 0 : index
      %c0_14 = arith.constant 0 : index
      %23 = vector.load %arg4[%c0_13, %c0_14] : memref<16x1xf32, #tpu.memory_space<vmem>>, vector<16x1xf32>
      %c0_15 = arith.constant 0 : index
      %c0_16 = arith.constant 0 : index
      %24 = vector.load %arg3[%c0_15, %c0_16] : memref<16x2xf32, #tpu.memory_space<vmem>>, vector<16x1xf32>
      tpu.vector_store %arg3[%c0_15, %c0_16], %23 {strides = array<i32>} : memref<16x2xf32, #tpu.memory_space<vmem>>, vector<16x1xf32>,
      %c0_17 = arith.constant 0 : index
      %c0_18 = arith.constant 0 : index
      %25 = vector.load %arg5[%c0_17, %c0_18] : memref<16x1xf32, #tpu.memory_space<vmem>>, vector<16x1xf32>
      %c0_19 = arith.constant 0 : index
      %c1 = arith.constant 1 : index
      %26 = vector.load %arg3[%c0_19, %c1] : memref<16x2xf32, #tpu.memory_space<vmem>>, vector<16x1xf32>
      tpu.vector_store %arg3[%c0_19, %c1], %25 {strides = array<i32>} : memref<16x2xf32, #tpu.memory_space<vmem>>, vector<16x1xf32>,
    } else {
    }
    return
  }
  func.func @transform_0(%arg0: i32, %arg1: i32) -> (i32, i32) {
    %c0_i32 = arith.constant 0 : i32
    return %arg0, %arg1 : i32, i32
  }
  func.func @transform_1(%arg0: i32, %arg1: i32) -> (i32, i32) {
    %c0_i32 = arith.constant 0 : i32
    %c0_i32_0 = arith.constant 0 : i32
    return %arg0, %c0_i32 : i32, i32
  }
}

</mosaic_0001>

<bundles_post_ra>
// kernel: tpu_custom_call.1
= control target key start
LH: loop header
LB: loop body
LE: loop exit
PB: predicated region body
PF: predicated region fallthrough
CT: control target
= control target key end

     0   :  { %6 = vsyncpa [#allocation5], 0  ;;  %s153_s9 = smov [#allocation4]   ;;  %s154_s11 = smov 128   ;;  %s199_s0 = inlined_call_operand.hbm [shape: f32[16,32], index: 0, kind: input, shape index: {}]   ;;  %s200_s1 = inlined_call_operand.vmem [shape: f32[16,2], index: 1, kind: output, shape index: {}]  }
   0x1   :  { %s11_s8 = sshll.u32 %s199_s0, 4  ;;  %s13_s10 = sshll.u32 %s153_s9, 4  ;;  %s12_s8 = int_to_ptr.hbm [resolvable:$true] %s11_s8  ;;  %s14_s10 = int_to_ptr.vmem [resolvable:$true] %s13_s10 }
   0x2   :  { %s155_s12 = smov 8  }
   0x3   :  { %19 = dma.hbm_to_vmem [thread:$0]  %s12_s8, 256, %s14_s10, [#allocation5], %s154_s11, %s154_s11, %s155_s12  }
   0x4   :  { %151 = dma.done.wait [#allocation5], 256  }
   0x5   :  { %152 = vsyncadd [#allocation5], 4294967040  ;;  %vm28_vm0 = vcmask 7168   ;;  %v156_v0 = vmov -inf   ;;  %vm37_vm1 = vcmask 261120   ;;  %v33_v1 = vld [vmem:[#allocation4] sm:$0xff] }
   0x6   :  { %29 = vst.msk [vmem:[#allocation2] sm:$0xff] %vm28_vm0, %v156_v0  ;;  %v38_v2 = vsel %vm37_vm1, %v33_v1, -inf  ;;  %v34_v3 = vld [vmem:[#allocation4 + $0x8] sm:$0xff]  ;;  %v157_v5 = vmov 0   ;;  %v158_v6 = vmov 0.0   ;;  %s159_s16 = smov 1  }
   0x7   :  { %30 = vst.msk [vmem:[#allocation2 + $0x8] sm:$0xff] %vm28_vm0, %v156_v0  ;;  %39 = vmax.xlane.f32.xlu0 %v38_v2  ;;  %v41_v4 = vsel %vm37_vm1, %v34_v3, -inf  ;;  %117 = vset.pattern.permute.xlu1 %v157_v5  ;;  %vm102_vm2 = vcmask 15368  }
   0x8   :  { %118 = vset.pattern.permute.xlu0 %v157_v5  ;;  %31 = vst.msk [vmem:[#allocation3] sm:$0xff] %vm28_vm0, %v158_v6 }
   0x9   :  { %32 = vst.msk [vmem:[#allocation3 + $0x8] sm:$0xff] %vm28_vm0, %v158_v6 }
   0xd   :  { %v35_v7 = vld [vmem:[#allocation2] sm:$0xff] }
   0xe   :  { %v36_v11 = vld [vmem:[#allocation2 + $0x8] sm:$0xff] }
   0xf   :  { %42 = vmax.xlane.f32.xlu0 %v41_v4  ;;  %v62_v30 = vld [vmem:[#allocation3] sm:$0xff] }
  0x10   :  { %v63_v35 = vld [vmem:[#allocation3 + $0x8] sm:$0xff] }
  0x7a   :  { %v40_v8 = vpop.xlane.xlu0 %39 }
  0x7b   :  { %v44_v9 = vmax.f32 %v35_v7, %v40_v8 }
  0x7d   :  { %v64_v10 = vsub.f32 %v35_v7, %v44_v9  ;;  %83 = vst.msk [vmem:[#allocation2] sm:$0xff] %vm28_vm0, %v44_v9  ;;  %48 = vperm.xlu1 %117, %v44_v9  }
  0x7f   :  { %v66_v27 = vmul.f32 1.442695, %v64_v10 }
  0x82   :  { %v43_v12 = vpop.xlane.xlu0 %42 }
  0x83   :  { %v45_v13 = vmax.f32 %v36_v11, %v43_v12 }
  0x84   :  { %v88_v14 = vld [vmem:[#allocation2] sm:$0xff] }
  0x85   :  { %v65_v15 = vsub.f32 %v36_v11, %v45_v13  ;;  %84 = vst.msk [vmem:[#allocation2 + $0x8] sm:$0xff] %vm28_vm0, %v45_v13  ;;  %53 = vperm.xlu1 %117, %v45_v13  }
  0x86   :  { %90 = vst.msk [vmem:[%s200_s1] sm:$0xff] %vm28_vm0, %v88_v14 }
  0x87   :  { %v68_v28 = vmul.f32 1.442695, %v65_v15 }
  0x8c   :  { %v89_v16 = vld [vmem:[#allocation2 + $0x8] sm:$0xff] }
  0x8d   :  { %91 = vst.msk [vmem:[%s200_s1 + $0x8] sm:$0xff] %vm28_vm0, %v89_v16 }
  0xef   :  { %v49_v17 = vpop.permute.xlu1 %48 }
  0xf0   :  { %v56_v18 = vsub.f32 %v33_v1, %v49_v17 }
  0xf2   :  { %v58_v19 = vmul.f32 1.442695, %v56_v18 }
  0xf4   :  { %119 = vpow2.f32 %v58_v19 }
  0xf7   :  { %v54_v20 = vpop.permute.xlu1 %53 }
  0xf8   :  { %v57_v21 = vsub.f32 %v34_v3, %v54_v20 }
  0xfa   :  { %v120_v22 = vpop.eup %119  ;;  %v60_v23 = vmul.f32 1.442695, %v57_v21 }
  0xfb   :  { %v72_v24 = vsel %vm37_vm1, %v120_v22, 0.0 }
  0xfc   :  { %121 = vpow2.f32 %v60_v23  ;;  %73 = vadd.xlane.f32.xlu2 %v72_v24 }
  0xfd   :  { %123 = vpow2.f32 %v66_v27 }
  0xfe   :  { %125 = vpow2.f32 %v68_v28 }
 0x102   :  { %v122_v25 = vpop.eup %121 }
 0x103   :  { %v75_v26 = vsel %vm37_vm1, %v122_v25, 0.0  ;;  %v124_v29 = vpop.eup %123 }
 0x104   :  { %76 = vadd.xlane.f32.xlu2 %v75_v26  ;;  %v70_v31 = vmul.f32 %v124_v29, %v62_v30  ;;  %v126_v34 = vpop.eup %125 }
 0x105   :  { %v71_v36 = vmul.f32 %v126_v34, %v63_v35 }
 0x16f   :  { %v74_v32 = vpop.xlane.xlu2 %73 }
 0x170   :  { %v78_v33 = vadd.f32 %v74_v32, %v70_v31 }
 0x172   :  { %81 = vst.msk [vmem:[#allocation3] sm:$0xff] %vm28_vm0, %v78_v33 }
 0x177   :  { %v77_v37 = vpop.xlane.xlu2 %76 }
 0x178   :  { %v79_v38 = vadd.f32 %v77_v37, %v71_v36 }
 0x179   :  { %v92_v39 = vld [vmem:[#allocation3] sm:$0xff] }
 0x17a   :  { %82 = vst.msk [vmem:[#allocation3 + $0x8] sm:$0xff] %vm28_vm0, %v79_v38  ;;  %96 = vrot.lane.b32.xlu0 %v92_v39, %s159_s16 }
 0x181   :  { %v93_v40 = vld [vmem:[#allocation3 + $0x8] sm:$0xff] }
 0x182   :  { %98 = vrot.lane.b32.xlu1 %v93_v40, %s159_s16 }
 0x1ec   :  { %v97_v41 = vpop.permute.xlu0 %96 }
 0x1ed   :  { %103 = vst.msk [vmem:[%s200_s1] sm:$0xff] %vm102_vm2, %v97_v41 }
 0x1f4   :  { %v99_v42 = vpop.permute.xlu1 %98 }
 0x1f5   :  { %104 = vst.msk [vmem:[%s200_s1 + $0x8] sm:$0xff] %vm102_vm2, %v99_v42 }
 0x1f6   :  { %109 = vsyncpa [#allocation5], 1 }

</bundles_post_ra>
